<compile_context>
chip_gen: v5e
topology: v5e:2x2
jax: 0.10.0
libtpu: 0.0.40
codegen_flags: <defaults>
</compile_context>

<pallas_src>
import functools
import math

import jax
import jax.numpy as jnp
from jax import lax
from jax.experimental import pallas as pl
from jax.experimental.pallas import tpu as pltpu

NEG_SLOPE = 0.01   # torch.nn.LeakyReLU default
MASK_FILL = -1e9
LANE = 128


def _leaky(x):
    return jnp.where(x > 0, x, NEG_SLOPE * x)


def _round_up(x, m):
    return (x + m - 1) // m * m


def _vmem_block_bytes(shape, dtype):
    """Approximate VMEM footprint of a block incl. (sublane, lane) padding."""
    itemsize = jnp.dtype(dtype).itemsize
    sub = {4: 8, 2: 16, 1: 32}.get(itemsize, 8)
    if len(shape) == 0:
        return itemsize
    if len(shape) == 1:
        return _round_up(int(shape[0]), LANE) * itemsize
    lead = 1
    for d in shape[:-2]:
        lead *= int(d)
    return (lead * _round_up(int(shape[-2]), sub)
            * _round_up(int(shape[-1]), LANE) * itemsize)


def _edge_aggregate_kernel(
    r_ref, qin_ref, k_ref, vl_ref,
    wq_ref, bq_ref, wg_ref, bg_ref, bl_ref,
    out_ref, *, d_attn, num_heads,
):
    tile_n = qin_ref.shape[0]
    qin = qin_ref[...]                                  # (tile_n, d_v+d_u) f32

    # Fused all-head Q / gate projections (tiny matmuls, kept in f32).  The
    # 1/sqrt(d_attn) score scale is folded into q once per tile.
    scale = 1.0 / math.sqrt(d_attn)
    q_all = _leaky(jnp.dot(qin, wq_ref[...], preferred_element_type=jnp.float32)
                   + bq_ref[...]) * scale               # (tile_n, H*d_attn)
    gates = _leaky(jnp.dot(qin, wg_ref[...], preferred_element_type=jnp.float32)
                   + bg_ref[...])                       # (tile_n, H)      f32
    q_all = q_all.astype(k_ref.dtype)                   # bf16 MXU operand

    # mask[i, e] = (receiver(e) == global node id i); padded edges carry -1 so
    # they match no node.  (tile,1) iota vs (1,E) row -> broadcast compare.
    node_ids = pl.program_id(0) * tile_n + lax.broadcasted_iota(
        jnp.int32, (tile_n, 1), 0)
    mask = node_ids == r_ref[...]                       # (tile_n, E_pad)

    k_all = k_ref[...]                                  # (E_pad, H*d_attn)

    for h in range(num_heads):                          # small H, unrolled
        lo = h * d_attn
        # q @ k^T with last-dim contraction (no materialized transpose).
        scores = lax.dot_general(
            q_all[:, lo:lo + d_attn], k_all[:, lo:lo + d_attn],
            (((1,), (1,)), ((), ())), preferred_element_type=jnp.float32)
        scores = jnp.where(mask, scores, MASK_FILL)
        scores = scores - scores.max(axis=-1, keepdims=True)
        p = jnp.exp(scores)                             # f32
        inv = pl.reciprocal(p.sum(axis=-1, keepdims=True), approx=True)

        # Output projection pre-folded into the edge values (vl = v @ Wl);
        # softmax normalization deferred to the small (tile, d_e_pad) result.
        x = jnp.dot(p.astype(vl_ref.dtype), vl_ref[h],
                    preferred_element_type=jnp.float32)  # (tile_n, d_e_pad)
        head = _leaky(x * inv + bl_ref[h])
        contrib = gates[:, h:h + 1] * head

        if h == 0:                                      # accumulate in out_ref
            out_ref[...] = contrib
        else:
            out_ref[...] += contrib


def edge_aggregate_local(nodes, edges, edge_index, u, batch, params, *,
                         d_attn, node_tile=256, mxu_dtype=jnp.bfloat16):
    """Pallas implementation of EdgeAggregateLocal.forward."""
    n_nodes, d_v = nodes.shape
    n_edges, d_e = edges.shape
    d_u = u.shape[1]
    num_heads = params["wq"].shape[0]
    d_vu = d_v + d_u

    s, r = edge_index[0], edge_index[1]

    # --- glue (gathers / concats) stays in the wrapper ----------------------
    qin = jnp.concatenate([nodes, u[batch]], axis=1).astype(jnp.float32)
    kin = jnp.concatenate([nodes[s], u[batch[s]]], axis=1).astype(jnp.float32)
    vin = jnp.concatenate([edges, u[batch[s]]], axis=1).astype(jnp.float32)

    # --- grid-invariant precompute: once, wrapper-side (not per node tile) ---
    def pack(w):  # (H, d_in, d_out) -> (d_in, H*d_out); column block h == w[h]
        h, d_in, d_out = w.shape
        return jnp.transpose(w, (1, 0, 2)).reshape(d_in, h * d_out)

    wq_p, bq_p = pack(params["wq"]), pack(params["bq"])
    wg_p, bg_p = pack(params["wg"]), pack(params["bg"])

    k_all = _leaky(kin @ pack(params["wk"]) + pack(params["bk"]))   # (E, H*d_attn)
    v_all = _leaky(vin @ pack(params["wv"]) + pack(params["bv"]))   # (E, H*d_attn)

    # Output projection padded to a 128-lane-dense slab and folded into v.
    d_e_pad = _round_up(d_e, LANE)
    wl_pad = jnp.pad(params["wl"], ((0, 0), (0, 0), (0, d_e_pad - d_e)))
    bl_pad = jnp.pad(params["bl"], ((0, 0), (0, 0), (0, d_e_pad - d_e)))
    vl = jnp.einsum("ehd,hdo->heo",
                    v_all.reshape(n_edges, num_heads, d_attn),
                    wl_pad)                                         # (H, E, d_e_pad)

    # --- edge-axis padding to a lane-dense multiple of 128 -------------------
    e_pad = _round_up(n_edges, LANE)
    r_row = jnp.pad(r.astype(jnp.int32), (0, e_pad - n_edges),
                    constant_values=-1).reshape(1, e_pad)
    k_all = jnp.pad(k_all, ((0, e_pad - n_edges), (0, 0))).astype(mxu_dtype)
    vl = jnp.pad(vl, ((0, 0), (0, e_pad - n_edges), (0, 0))).astype(mxu_dtype)

    # --- node-axis tiling -----------------------------------------------------
    try:
        phys_vmem = pltpu.get_tpu_info().vmem_capacity_bytes
    except Exception:                                   # noqa: BLE001
        phys_vmem = 64 << 20                            # v7x worst case / core
    node_tile_eff = max(8, min(_round_up(node_tile, 8), _round_up(n_nodes, 8)))
    # Keep the (node_tile, E_pad) score/p working set under ~1/4 of VMEM.
    while node_tile_eff > 128 and 4 * node_tile_eff * e_pad * 4 > phys_vmem // 4:
        node_tile_eff //= 2
    n_tiles = pl.cdiv(n_nodes, node_tile_eff)
    n_pad = n_tiles * node_tile_eff
    if n_pad != n_nodes:                                # padded rows match no edge
        qin = jnp.pad(qin, ((0, n_pad - n_nodes), (0, 0)))

    # --- VMEM budget derived from the actual resident blocks -----------------
    invariant_blocks = [
        ((1, e_pad), jnp.int32),
        ((e_pad, num_heads * d_attn), mxu_dtype),
        ((num_heads, e_pad, d_e_pad), mxu_dtype),
        ((d_vu, num_heads * d_attn), jnp.float32),
        ((1, num_heads * d_attn), jnp.float32),
        ((d_vu, num_heads), jnp.float32),
        ((1, num_heads), jnp.float32),
        ((num_heads, 1, d_e_pad), jnp.float32),
    ]
    pipelined_blocks = [
        ((node_tile_eff, d_vu), jnp.float32),           # qin tile
        ((node_tile_eff, d_e_pad), jnp.float32),        # out tile
    ]
    working = 4 * node_tile_eff * e_pad * 4             # scores / p / mask slack
    resident = (sum(_vmem_block_bytes(s_, d_) for s_, d_ in invariant_blocks)
                + 2 * sum(_vmem_block_bytes(s_, d_) for s_, d_ in pipelined_blocks)
                + working)
    vmem_limit = int(max(32 << 20,
                         min(resident * 3 // 2 + (8 << 20), phys_vmem * 3 // 4)))

    shared2 = lambda i: (0, 0)
    shared3 = lambda i: (0, 0, 0)
    tiled = lambda i: (i, 0)

    def invariant(shape, index_map):
        # Grid-invariant residents: single-buffered to halve their VMEM cost.
        try:
            return pl.BlockSpec(shape, index_map, pipeline_mode=pl.Buffered(1))
        except TypeError:                               # older jax w/o pipeline_mode
            return pl.BlockSpec(shape, index_map)

    kernel = functools.partial(_edge_aggregate_kernel,
                               d_attn=d_attn, num_heads=num_heads)

    out = pl.pallas_call(
        kernel,
        out_shape=jax.ShapeDtypeStruct((n_pad, d_e_pad), jnp.float32),
        grid_spec=pltpu.PrefetchScalarGridSpec(
            num_scalar_prefetch=0,
            grid=(n_tiles,),
            in_specs=[
                invariant((1, e_pad), shared2),                        # receivers
                pl.BlockSpec((node_tile_eff, d_vu), tiled),            # qin (tiled)
                invariant((e_pad, num_heads * d_attn), shared2),       # k_all
                invariant((num_heads, e_pad, d_e_pad), shared3),       # vl = v @ Wl
                invariant((d_vu, num_heads * d_attn), shared2),        # wq
                invariant((1, num_heads * d_attn), shared2),           # bq
                invariant((d_vu, num_heads), shared2),                 # wg
                invariant((1, num_heads), shared2),                    # bg
                invariant((num_heads, 1, d_e_pad), shared3),           # bl
            ],
            out_specs=pl.BlockSpec((node_tile_eff, d_e_pad), tiled),
        ),
        compiler_params=pltpu.CompilerParams(
            dimension_semantics=("parallel",),
            vmem_limit_bytes=vmem_limit,
        ),
    )(r_row, qin, k_all, vl, wq_p, bq_p, wg_p, bg_p, bl_pad)

    return out[:n_nodes, :d_e]


def reference(nodes, edges, edge_index, u, batch, params, *, d_attn):
    """Plain-JAX reference mirroring the PyTorch module."""
    s, r = edge_index[0], edge_index[1]
    n_nodes = nodes.shape[0]
    qin = jnp.concatenate([nodes, u[batch]], axis=1)
    kin = jnp.concatenate([nodes[s], u[batch[s]]], axis=1)
    vin = jnp.concatenate([edges, u[batch[s]]], axis=1)
    mask = (r[None, :] == jnp.arange(n_nodes)[:, None])

    out = 0.0
    for h in range(params["wq"].shape[0]):
        q = _leaky(qin @ params["wq"][h] + params["bq"][h])
        k = _leaky(kin @ params["wk"][h] + params["bk"][h])
        v = _leaky(vin @ params["wv"][h] + params["bv"][h])
        scores = (q @ k.T) / math.sqrt(d_attn)
        scores = jnp.where(mask, scores, MASK_FILL)
        attn = jax.nn.softmax(scores, axis=-1)
        head = _leaky((attn @ v) @ params["wl"][h] + params["bl"][h])
        gate = _leaky(qin @ params["wg"][h] + params["bg"][h])
        out = out + gate * head
    return out


def init_params(key, d_v, d_e, d_u, d_attn, num_heads):
    """Deterministic synthetic parameters (torch.nn.Linear-style, stored as (in, out))."""
    ks = jax.random.split(key, 10)

    def uni(k, shape, fan_in):
        bound = 1.0 / math.sqrt(fan_in)
        return jax.random.uniform(k, shape, jnp.float32, -bound, bound)

    d_vu, d_eu = d_v + d_u, d_e + d_u
    return {
        "wq": uni(ks[0], (num_heads, d_vu, d_attn), d_vu),
        "bq": uni(ks[1], (num_heads, 1, d_attn), d_vu),
        "wk": uni(ks[2], (num_heads, d_vu, d_attn), d_vu),
        "bk": uni(ks[3], (num_heads, 1, d_attn), d_vu),
        "wv": uni(ks[4], (num_heads, d_eu, d_attn), d_eu),
        "bv": uni(ks[5], (num_heads, 1, d_attn), d_eu),
        "wl": uni(ks[6], (num_heads, d_attn, d_e), d_attn),
        "bl": uni(ks[7], (num_heads, 1, d_e), d_attn),
        "wg": uni(ks[8], (num_heads, d_vu, 1), d_vu),
        "bg": uni(ks[9], (num_heads, 1, 1), d_vu),
    }


if __name__ == "__main__":
    d_v, d_e, d_u, d_attn, num_heads = 8, 8, 4, 16, 2
    n_nodes, n_edges, n_batch = 16, 32, 2

    key = jax.random.PRNGKey(0)
    k_nodes, k_edges, k_u, k_s, k_params = jax.random.split(key, 5)

    nodes = jax.random.normal(k_nodes, (n_nodes, d_v), jnp.float32)
    edges = jax.random.normal(k_edges, (n_edges, d_e), jnp.float32)
    u = jax.random.normal(k_u, (n_batch, d_u), jnp.float32)
    batch = jnp.concatenate([jnp.zeros(8, jnp.int32), jnp.ones(8, jnp.int32)])

    # receivers: every node gets 2 incoming edges; senders: node in same graph
    r = jnp.arange(n_edges, dtype=jnp.int32) % n_nodes
    offs = jax.random.randint(k_s, (n_edges,), 1, 8, jnp.int32)
    s = (r % 8 + offs) % 8 + 8 * (r // 8)
    edge_index = jnp.stack([s, r])

    params = init_params(k_params, d_v, d_e, d_u, d_attn, num_heads)
    ref = reference(nodes, edges, edge_index, u, batch, params, d_attn=d_attn)

    # f32 MXU path: tight tolerance (approx reciprocal + deferred normalization).
    out_f32 = edge_aggregate_local(nodes, edges, edge_index, u, batch, params,
                                   d_attn=d_attn, mxu_dtype=jnp.float32)
    out_f32 = jax.block_until_ready(out_f32)
    assert out_f32.shape == (n_nodes, d_e)
    assert jnp.allclose(out_f32, ref, rtol=2e-3, atol=2e-3), \
        float(jnp.abs(out_f32 - ref).max())

    # bf16 MXU fast path (default): looser tolerance from bf16 matmul operands.
    out_bf16 = edge_aggregate_local(nodes, edges, edge_index, u, batch, params,
                                    d_attn=d_attn, mxu_dtype=jnp.bfloat16)
    out_bf16 = jax.block_until_ready(out_bf16)
    rel = float(jnp.max(jnp.abs(out_bf16 - ref)) / (jnp.max(jnp.abs(ref)) + 1e-6))
    assert rel < 5e-2, rel

    print("KERNEL_OK")
</pallas_src>

<mosaic_0001>
module attributes {stable_mosaic.version = 11 : i64} {
  func.func @_edge_aggregate_kernel(%arg0: i32, %arg1: memref<1x128xi32, #tpu.memory_space<vmem>>, %arg2: memref<16x12xf32, #tpu.memory_space<vmem>>, %arg3: memref<128x32xf32, #tpu.memory_space<vmem>>, %arg4: memref<2x128x128xf32, #tpu.memory_space<vmem>>, %arg5: memref<12x32xf32, #tpu.memory_space<vmem>>, %arg6: memref<1x32xf32, #tpu.memory_space<vmem>>, %arg7: memref<12x2xf32, #tpu.memory_space<vmem>>, %arg8: memref<1x2xf32, #tpu.memory_space<vmem>>, %arg9: memref<2x1x128xf32, #tpu.memory_space<vmem>>, %arg10: memref<16x128xf32, #tpu.memory_space<vmem>>) attributes {dimension_semantics = [#tpu.dimension_semantics<parallel>], iteration_bounds = array<i64: 1>, scalar_prefetch = 0 : i64, scratch_operands = 0 : i64, tpu.core_type = #tpu.core_type<tc>, window_params = [{pipeline_mode = #tpu.pipeline_mode<synchronous>, transform_indices = @transform_0, window_bounds = array<i64: 1, 128>}, {transform_indices = @transform_1, window_bounds = array<i64: 16, 12>}, {pipeline_mode = #tpu.pipeline_mode<synchronous>, transform_indices = @transform_2, window_bounds = array<i64: 128, 32>}, {pipeline_mode = #tpu.pipeline_mode<synchronous>, transform_indices = @transform_3, window_bounds = array<i64: 2, 128, 128>}, {pipeline_mode = #tpu.pipeline_mode<synchronous>, transform_indices = @transform_4, window_bounds = array<i64: 12, 32>}, {pipeline_mode = #tpu.pipeline_mode<synchronous>, transform_indices = @transform_5, window_bounds = array<i64: 1, 32>}, {pipeline_mode = #tpu.pipeline_mode<synchronous>, transform_indices = @transform_6, window_bounds = array<i64: 12, 2>}, {pipeline_mode = #tpu.pipeline_mode<synchronous>, transform_indices = @transform_7, window_bounds = array<i64: 1, 2>}, {pipeline_mode = #tpu.pipeline_mode<synchronous>, transform_indices = @transform_8, window_bounds = array<i64: 2, 1, 128>}, {transform_indices = @transform_9, window_bounds = array<i64: 16, 128>}]} {
    %c0 = arith.constant 0 : index
    %c0_0 = arith.constant 0 : index
    %0 = vector.load %arg2[%c0, %c0_0] : memref<16x12xf32, #tpu.memory_space<vmem>>, vector<16x12xf32>
    %c0_1 = arith.constant 0 : index
    %c0_2 = arith.constant 0 : index
    %1 = vector.load %arg5[%c0_1, %c0_2] : memref<12x32xf32, #tpu.memory_space<vmem>>, vector<12x32xf32>
    %cst = arith.constant dense<0.000000e+00> : vector<16x32xf32>
    %2 = tpu.matmul %0, %1, %cst {dimension_numbers = #tpu.dot_dimension_numbers<[1], [0], [0], [1], [0, 0, 1, 1], [], []>} : vector<16x12xf32>, vector<12x32xf32>, vector<16x32xf32> -> vector<16x32xf32>
    %c0_3 = arith.constant 0 : index
    %c0_4 = arith.constant 0 : index
    %3 = vector.load %arg6[%c0_3, %c0_4] : memref<1x32xf32, #tpu.memory_space<vmem>>, vector<1x32xf32>
    %4 = vector.broadcast %3 : vector<1x32xf32> to vector<16x32xf32>
    %5 = arith.addf %2, %4 : vector<16x32xf32>
    %cst_5 = arith.constant 0.000000e+00 : f32
    %6 = vector.broadcast %cst_5 : f32 to vector<16x32xf32>
    %7 = arith.cmpf ogt, %5, %6 : vector<16x32xf32>
    %cst_6 = arith.constant 0.00999999977 : f32
    %8 = vector.broadcast %cst_6 : f32 to vector<16x32xf32>
    %9 = arith.mulf %8, %5 : vector<16x32xf32>
    %10 = arith.select %7, %5, %9 : vector<16x32xi1>, vector<16x32xf32>
    %cst_7 = arith.constant 2.500000e-01 : f32
    %11 = vector.broadcast %cst_7 : f32 to vector<16x32xf32>
    %12 = arith.mulf %10, %11 : vector<16x32xf32>
    %c0_8 = arith.constant 0 : index
    %c0_9 = arith.constant 0 : index
    %13 = vector.load %arg7[%c0_8, %c0_9] : memref<12x2xf32, #tpu.memory_space<vmem>>, vector<12x2xf32>
    %cst_10 = arith.constant dense<0.000000e+00> : vector<16x2xf32>
    %14 = tpu.matmul %0, %13, %cst_10 {dimension_numbers = #tpu.dot_dimension_numbers<[1], [0], [0], [1], [0, 0, 1, 1], [], []>} : vector<16x12xf32>, vector<12x2xf32>, vector<16x2xf32> -> vector<16x2xf32>
    %c0_11 = arith.constant 0 : index
    %c0_12 = arith.constant 0 : index
    %15 = vector.load %arg8[%c0_11, %c0_12] : memref<1x2xf32, #tpu.memory_space<vmem>>, vector<1x2xf32>
    %16 = vector.broadcast %15 : vector<1x2xf32> to vector<16x2xf32>
    %17 = arith.addf %14, %16 : vector<16x2xf32>
    %cst_13 = arith.constant 0.000000e+00 : f32
    %18 = vector.broadcast %cst_13 : f32 to vector<16x2xf32>
    %19 = arith.cmpf ogt, %17, %18 : vector<16x2xf32>
    %cst_14 = arith.constant 0.00999999977 : f32
    %20 = vector.broadcast %cst_14 : f32 to vector<16x2xf32>
    %21 = arith.mulf %20, %17 : vector<16x2xf32>
    %22 = arith.select %19, %17, %21 : vector<16x2xi1>, vector<16x2xf32>
    %c16_i32 = arith.constant 16 : i32
    %23 = arith.muli %arg0, %c16_i32 : i32
    %24 = tpu.iota {dimensions = array<i32: 0>} : vector<16x1xi32>
    %25 = vector.broadcast %23 : i32 to vector<16x1xi32>
    %26 = arith.addi %25, %24 : vector<16x1xi32>
    %c0_15 = arith.constant 0 : index
    %c0_16 = arith.constant 0 : index
    %27 = vector.load %arg1[%c0_15, %c0_16] : memref<1x128xi32, #tpu.memory_space<vmem>>, vector<1x128xi32>
    %28 = vector.broadcast %26 : vector<16x1xi32> to vector<16x128xi32>
    %29 = vector.broadcast %27 : vector<1x128xi32> to vector<16x128xi32>
    %30 = arith.cmpi eq, %28, %29 : vector<16x128xi32>
    %c0_17 = arith.constant 0 : index
    %c0_18 = arith.constant 0 : index
    %31 = vector.load %arg3[%c0_17, %c0_18] : memref<128x32xf32, #tpu.memory_space<vmem>>, vector<128x32xf32>
    %32 = vector.extract_strided_slice %12 {offsets = [0, 0], sizes = [16, 16], strides = [1, 1]} : vector<16x32xf32> to vector<16x16xf32>
    %33 = vector.extract_strided_slice %31 {offsets = [0, 0], sizes = [128, 16], strides = [1, 1]} : vector<128x32xf32> to vector<128x16xf32>
    %cst_19 = arith.constant dense<0.000000e+00> : vector<16x128xf32>
    %34 = tpu.matmul %32, %33, %cst_19 {dimension_numbers = #tpu.dot_dimension_numbers<[1], [1], [0], [0], [0, 0, 1, 0], [], []>} : vector<16x16xf32>, vector<128x16xf32>, vector<16x128xf32> -> vector<16x128xf32>
    %cst_20 = arith.constant -1.000000e+09 : f32
    %35 = vector.broadcast %cst_20 : f32 to vector<16x128xf32>
    %36 = arith.select %30, %34, %35 : vector<16x128xi1>, vector<16x128xf32>
    %cst_21 = arith.constant dense<0xFF800000> : vector<16xf32>
    %37 = vector.multi_reduction <maximumf>, %36, %cst_21 [1] : vector<16x128xf32> to vector<16xf32>
    %38 = vector.shape_cast %37 : vector<16xf32> to vector<16x1xf32>
    %39 = vector.broadcast %38 : vector<16x1xf32> to vector<16x128xf32>
    %40 = arith.subf %36, %39 : vector<16x128xf32>
    %41 = math.exp %40 : vector<16x128xf32>
    %cst_22 = arith.constant dense<0.000000e+00> : vector<16xf32>
    %42 = vector.multi_reduction <add>, %41, %cst_22 [1] : vector<16x128xf32> to vector<16xf32>
    %43 = vector.shape_cast %42 : vector<16xf32> to vector<16x1xf32>
    %44 = tpu.reciprocal %43 {approx = true} : vector<16x1xf32> -> vector<16x1xf32>
    %c0_23 = arith.constant 0 : index
    %c0_24 = arith.constant 0 : index
    %c0_25 = arith.constant 0 : index
    %45 = vector.load %arg4[%c0_23, %c0_24, %c0_25] : memref<2x128x128xf32, #tpu.memory_space<vmem>>, vector<1x128x128xf32>
    %46 = vector.shape_cast %45 : vector<1x128x128xf32> to vector<128x128xf32>
    %cst_26 = arith.constant dense<0.000000e+00> : vector<16x128xf32>
    %47 = tpu.matmul %41, %46, %cst_26 {dimension_numbers = #tpu.dot_dimension_numbers<[1], [0], [0], [1], [0, 0, 1, 1], [], []>} : vector<16x128xf32>, vector<128x128xf32>, vector<16x128xf32> -> vector<16x128xf32>
    %48 = vector.broadcast %44 : vector<16x1xf32> to vector<16x128xf32>
    %49 = arith.mulf %47, %48 : vector<16x128xf32>
    %c0_27 = arith.constant 0 : index
    %c0_28 = arith.constant 0 : index
    %c0_29 = arith.constant 0 : index
    %50 = vector.load %arg9[%c0_27, %c0_28, %c0_29] : memref<2x1x128xf32, #tpu.memory_space<vmem>>, vector<1x1x128xf32>
    %51 = vector.shape_cast %50 : vector<1x1x128xf32> to vector<1x128xf32>
    %52 = vector.broadcast %51 : vector<1x128xf32> to vector<16x128xf32>
    %53 = arith.addf %49, %52 : vector<16x128xf32>
    %cst_30 = arith.constant 0.000000e+00 : f32
    %54 = vector.broadcast %cst_30 : f32 to vector<16x128xf32>
    %55 = arith.cmpf ogt, %53, %54 : vector<16x128xf32>
    %cst_31 = arith.constant 0.00999999977 : f32
    %56 = vector.broadcast %cst_31 : f32 to vector<16x128xf32>
    %57 = arith.mulf %56, %53 : vector<16x128xf32>
    %58 = arith.select %55, %53, %57 : vector<16x128xi1>, vector<16x128xf32>
    %59 = vector.extract_strided_slice %22 {offsets = [0, 0], sizes = [16, 1], strides = [1, 1]} : vector<16x2xf32> to vector<16x1xf32>
    %60 = vector.broadcast %59 : vector<16x1xf32> to vector<16x128xf32>
    %61 = arith.mulf %60, %58 : vector<16x128xf32>
    %c0_32 = arith.constant 0 : index
    %c0_33 = arith.constant 0 : index
    %62 = vector.load %arg10[%c0_32, %c0_33] : memref<16x128xf32, #tpu.memory_space<vmem>>, vector<16x128xf32>
    tpu.vector_store %arg10[%c0_32, %c0_33], %61 {strides = array<i32>} : memref<16x128xf32, #tpu.memory_space<vmem>>, vector<16x128xf32>,
    %63 = vector.extract_strided_slice %12 {offsets = [0, 16], sizes = [16, 16], strides = [1, 1]} : vector<16x32xf32> to vector<16x16xf32>
    %64 = vector.extract_strided_slice %31 {offsets = [0, 16], sizes = [128, 16], strides = [1, 1]} : vector<128x32xf32> to vector<128x16xf32>
    %cst_34 = arith.constant dense<0.000000e+00> : vector<16x128xf32>
    %65 = tpu.matmul %63, %64, %cst_34 {dimension_numbers = #tpu.dot_dimension_numbers<[1], [1], [0], [0], [0, 0, 1, 0], [], []>} : vector<16x16xf32>, vector<128x16xf32>, vector<16x128xf32> -> vector<16x128xf32>
    %cst_35 = arith.constant -1.000000e+09 : f32
    %66 = vector.broadcast %cst_35 : f32 to vector<16x128xf32>
    %67 = arith.select %30, %65, %66 : vector<16x128xi1>, vector<16x128xf32>
    %cst_36 = arith.constant dense<0xFF800000> : vector<16xf32>
    %68 = vector.multi_reduction <maximumf>, %67, %cst_36 [1] : vector<16x128xf32> to vector<16xf32>
    %69 = vector.shape_cast %68 : vector<16xf32> to vector<16x1xf32>
    %70 = vector.broadcast %69 : vector<16x1xf32> to vector<16x128xf32>
    %71 = arith.subf %67, %70 : vector<16x128xf32>
    %72 = math.exp %71 : vector<16x128xf32>
    %cst_37 = arith.constant dense<0.000000e+00> : vector<16xf32>
    %73 = vector.multi_reduction <add>, %72, %cst_37 [1] : vector<16x128xf32> to vector<16xf32>
    %74 = vector.shape_cast %73 : vector<16xf32> to vector<16x1xf32>
    %75 = tpu.reciprocal %74 {approx = true} : vector<16x1xf32> -> vector<16x1xf32>
    %c1 = arith.constant 1 : index
    %c0_38 = arith.constant 0 : index
    %c0_39 = arith.constant 0 : index
    %76 = vector.load %arg4[%c1, %c0_38, %c0_39] : memref<2x128x128xf32, #tpu.memory_space<vmem>>, vector<1x128x128xf32>
    %77 = vector.shape_cast %76 : vector<1x128x128xf32> to vector<128x128xf32>
    %cst_40 = arith.constant dense<0.000000e+00> : vector<16x128xf32>
    %78 = tpu.matmul %72, %77, %cst_40 {dimension_numbers = #tpu.dot_dimension_numbers<[1], [0], [0], [1], [0, 0, 1, 1], [], []>} : vector<16x128xf32>, vector<128x128xf32>, vector<16x128xf32> -> vector<16x128xf32>
    %79 = vector.broadcast %75 : vector<16x1xf32> to vector<16x128xf32>
    %80 = arith.mulf %78, %79 : vector<16x128xf32>
    %c1_41 = arith.constant 1 : index
    %c0_42 = arith.constant 0 : index
    %c0_43 = arith.constant 0 : index
    %81 = vector.load %arg9[%c1_41, %c0_42, %c0_43] : memref<2x1x128xf32, #tpu.memory_space<vmem>>, vector<1x1x128xf32>
    %82 = vector.shape_cast %81 : vector<1x1x128xf32> to vector<1x128xf32>
    %83 = vector.broadcast %82 : vector<1x128xf32> to vector<16x128xf32>
    %84 = arith.addf %80, %83 : vector<16x128xf32>
    %cst_44 = arith.constant 0.000000e+00 : f32
    %85 = vector.broadcast %cst_44 : f32 to vector<16x128xf32>
    %86 = arith.cmpf ogt, %84, %85 : vector<16x128xf32>
    %cst_45 = arith.constant 0.00999999977 : f32
    %87 = vector.broadcast %cst_45 : f32 to vector<16x128xf32>
    %88 = arith.mulf %87, %84 : vector<16x128xf32>
    %89 = arith.select %86, %84, %88 : vector<16x128xi1>, vector<16x128xf32>
    %90 = vector.extract_strided_slice %22 {offsets = [0, 1], sizes = [16, 1], strides = [1, 1]} : vector<16x2xf32> to vector<16x1xf32>
    %91 = vector.broadcast %90 : vector<16x1xf32> to vector<16x128xf32>
    %92 = arith.mulf %91, %89 : vector<16x128xf32>
    %c0_46 = arith.constant 0 : index
    %c0_47 = arith.constant 0 : index
    %93 = vector.load %arg10[%c0_46, %c0_47] : memref<16x128xf32, #tpu.memory_space<vmem>>, vector<16x128xf32>
    %94 = arith.addf %93, %92 : vector<16x128xf32>
    %c0_48 = arith.constant 0 : index
    %c0_49 = arith.constant 0 : index
    %95 = vector.load %arg10[%c0_48, %c0_49] : memref<16x128xf32, #tpu.memory_space<vmem>>, vector<16x128xf32>
    tpu.vector_store %arg10[%c0_48, %c0_49], %94 {strides = array<i32>} : memref<16x128xf32, #tpu.memory_space<vmem>>, vector<16x128xf32>,
    return
  }
  func.func @transform_0(%arg0: i32) -> (i32, i32) {
    %c0_i32 = arith.constant 0 : i32
    %c0_i32_0 = arith.constant 0 : i32
    %c0_i32_1 = arith.constant 0 : i32
    return %c0_i32, %c0_i32_0 : i32, i32
  }
  func.func @transform_1(%arg0: i32) -> (i32, i32) {
    %c0_i32 = arith.constant 0 : i32
    %c0_i32_0 = arith.constant 0 : i32
    return %arg0, %c0_i32 : i32, i32
  }
  func.func @transform_2(%arg0: i32) -> (i32, i32) {
    %c0_i32 = arith.constant 0 : i32
    %c0_i32_0 = arith.constant 0 : i32
    %c0_i32_1 = arith.constant 0 : i32
    return %c0_i32, %c0_i32_0 : i32, i32
  }
  func.func @transform_3(%arg0: i32) -> (i32, i32, i32) {
    %c0_i32 = arith.constant 0 : i32
    %c0_i32_0 = arith.constant 0 : i32
    %c0_i32_1 = arith.constant 0 : i32
    %c0_i32_2 = arith.constant 0 : i32
    return %c0_i32, %c0_i32_0, %c0_i32_1 : i32, i32, i32
  }
  func.func @transform_4(%arg0: i32) -> (i32, i32) {
    %c0_i32 = arith.constant 0 : i32
    %c0_i32_0 = arith.constant 0 : i32
    %c0_i32_1 = arith.constant 0 : i32
    return %c0_i32, %c0_i32_0 : i32, i32
  }
  func.func @transform_5(%arg0: i32) -> (i32, i32) {
    %c0_i32 = arith.constant 0 : i32
    %c0_i32_0 = arith.constant 0 : i32
    %c0_i32_1 = arith.constant 0 : i32
    return %c0_i32, %c0_i32_0 : i32, i32
  }
  func.func @transform_6(%arg0: i32) -> (i32, i32) {
    %c0_i32 = arith.constant 0 : i32
    %c0_i32_0 = arith.constant 0 : i32
    %c0_i32_1 = arith.constant 0 : i32
    return %c0_i32, %c0_i32_0 : i32, i32
  }
  func.func @transform_7(%arg0: i32) -> (i32, i32) {
    %c0_i32 = arith.constant 0 : i32
    %c0_i32_0 = arith.constant 0 : i32
    %c0_i32_1 = arith.constant 0 : i32
    return %c0_i32, %c0_i32_0 : i32, i32
  }
  func.func @transform_8(%arg0: i32) -> (i32, i32, i32) {
    %c0_i32 = arith.constant 0 : i32
    %c0_i32_0 = arith.constant 0 : i32
    %c0_i32_1 = arith.constant 0 : i32
    %c0_i32_2 = arith.constant 0 : i32
    return %c0_i32, %c0_i32_0, %c0_i32_1 : i32, i32, i32
  }
  func.func @transform_9(%arg0: i32) -> (i32, i32) {
    %c0_i32 = arith.constant 0 : i32
    %c0_i32_0 = arith.constant 0 : i32
    return %arg0, %c0_i32 : i32, i32
  }
}

</mosaic_0001>

<bundles_post_ra>
// kernel: tpu_custom_call.1
= control target key start
LH: loop header
LB: loop body
LE: loop exit
PB: predicated region body
PF: predicated region fallthrough
CT: control target
= control target key end

     0   :  { %14 = vsyncpa [#allocation3], 0  ;;  %s908_s0 = inlined_call_operand.vmem [shape: s32[1,128], index: 0, kind: input, shape index: {}]   ;;  %s909_s1 = inlined_call_operand.vmem [shape: f32[16,12], index: 1, kind: input, shape index: {}]   ;;  %s910_s2 = inlined_call_operand.vmem [shape: f32[128,32], index: 2, kind: input, shape index: {}]   ;;  %s911_s3 = inlined_call_operand.hbm [shape: f32[2,128,128], index: 3, kind: input, shape index: {}]   ;;  %s912_s4 = inlined_call_operand.vmem [shape: f32[12,32], index: 4, kind: input, shape index: {}]   ;;  %s913_s5 = inlined_call_operand.vmem [shape: f32[1,32], index: 5, kind: input, shape index: {}]   ;;  %s914_s6 = inlined_call_operand.vmem [shape: f32[12,2], index: 6, kind: input, shape index: {}]   ;;  %s915_s7 = inlined_call_operand.vmem [shape: f32[1,2], index: 7, kind: input, shape index: {}]   ;;  %s916_s8 = inlined_call_operand.vmem [shape: f32[2,1,128], index: 8, kind: input, shape index: {}]   ;;  %s917_s9 = inlined_call_operand.hbm [shape: f32[16,128], index: 9, kind: output, shape index: {}]  }
   0x1   :  { %15 = vsyncpa [#allocation4], 0  ;;  %s26_s11 = sshll.u32 %s911_s3, 4  ;;  %s657_s12 = smov [#allocation2]   ;;  %s27_s11 = int_to_ptr.hbm [resolvable:$true] %s26_s11 }
   0x2   :  { %s28_s13 = sshll.u32 %s657_s12, 4  ;;  %s658_s14 = smov 128   ;;  %s29_s13 = int_to_ptr.vmem [resolvable:$true] %s28_s13 }
   0x3   :  { %s659_s15 = smov 8  }
   0x4   :  { %34 = dma.hbm_to_vmem [thread:$0]  %s27_s11, 4096, %s29_s13, [#allocation3], %s658_s14, %s658_s14, %s659_s15  }
   0x5   :  { %653 = dma.done.wait [#allocation3], 4096  }
   0x6   :  { %654 = vsyncadd [#allocation3], 4294963200  ;;  %vm64_vm0 = vcmask 1043456   ;;  %vm164_vm1 = vcmask 130048   ;;  %v52_v0 = vld [vmem:[%s912_s4 + $0x8] sm:$0xf]  ;;  %v138_v51 = vlaneseq }
   0x7   :  { %v51_v1 = vld [vmem:[%s912_s4] sm:$0xff]  ;;  %530 = vmatpush.msk.msra.mxu3 %vm64_vm0, %v52_v0  ;;  %vm57_vm2 = vcmask 97280   ;;  %v163_v3 = vld [vmem:[%s910_s2 + $0x78] sm:$0xff]  ;;  %s660_s23 = smov 112   ;;  %v161_v4 = vld [vmem:[%s910_s2 + $0x68] sm:$0xff]  ;;  %v661_v49 = vmov 0  }
   0x8   :  { %v730_v2 = vld [vmem:[%s909_s1] sm:$0xff]  ;;  %361 = vrot.lane.b32.xlu0 %v163_v3, %s660_s23  ;;  %536 = vmatpush.xpose.msk.msra.mxu2 %vm164_vm1, %v163_v3  ;;  %v159_v5 = vld [vmem:[%s910_s2 + $0x58] sm:$0xff]  ;;  %v162_v6 = vld [vmem:[%s910_s2 + $0x70] sm:$0xff]  ;;  %v139_v53 = vshrl.u32 %v138_v51, 7  ;;  %v662_v51 = vmov 1   ;;  %s517_s25 = sshll.u32 %s917_s9, 4  ;;  %s518_s25 = int_to_ptr.hbm [resolvable:$true] %s517_s25 }
   0x9   :  { %83 = vmatpush.msra.mxu3 %v51_v1  ;;  %357 = vrot.lane.b32.xlu1 %v161_v4, %s660_s23  ;;  %v160_v7 = vld [vmem:[%s910_s2 + $0x60] sm:$0xff]  ;;  %v757_v8 = vld [vmem:[%s909_s1 + $0x8] sm:$0xff]  ;;  %v158_v9 = vld [vmem:[%s910_s2 + $0x50] sm:$0xff] }
   0xa   :  { %531 = vmatmul.msk.f32.vlgmr.msra.gmra.mxu3 %vm57_vm2, %v730_v2  ;;  %353 = vrot.lane.b32.xlu2 %v159_v5, %s660_s23  ;;  %v157_v10 = vld [vmem:[%s910_s2 + $0x48] sm:$0xff]  ;;  %v156_v11 = vld [vmem:[%s910_s2 + $0x40] sm:$0xff]  ;;  %v155_v12 = vld [vmem:[%s910_s2 + $0x38] sm:$0xff]  ;;  %v868_v57 = vadd.s32 8, %v139_v53 }
   0xb   :  { %v154_v13 = vld [vmem:[%s910_s2 + $0x30] sm:$0xff]  ;;  %v153_v14 = vld [vmem:[%s910_s2 + $0x28] sm:$0xff]  ;;  %v152_v15 = vld [vmem:[%s910_s2 + $0x20] sm:$0xff]  ;;  %580 = vset.pattern.permute.xlu1 %v661_v49  ;;  %581 = vset.pattern.permute.xlu2 %v661_v49 }
   0xc   :  { %537 = vmatpush.xpose.msk.msra.mxu2 %vm164_vm1, %v162_v6  ;;  %v151_v16 = vld [vmem:[%s910_s2 + $0x18] sm:$0xff]  ;;  %v150_v17 = vld [vmem:[%s910_s2 + $0x10] sm:$0xff]  ;;  %v149_v18 = vld [vmem:[%s910_s2 + $0x8] sm:$0xff]  ;;  %582 = vset.pattern.permute.xlu0 %v662_v51 }
   0xd   :  { %v148_v19 = vld [vmem:[%s910_s2] sm:$0xff]  ;;  %v100_v23 = vld [vmem:[%s914_s6 + $0x8] sm:$0xf]  ;;  %v275_v58 = vld [vmem:[#allocation2 + $0x78] sm:$0xff] }
   0xe   :  { %533 = vmatpush.msk.msra.mxu1 %vm64_vm0, %v100_v23  ;;  %v584_v25 = vld [vmem:[%s913_s5] ss:$0 sm:$0xff]  ;;  %v274_v59 = vld [vmem:[#allocation2 + $0x70] sm:$0xff]  ;;  %276 = vmatpush.msrb.mxu3 %v275_v58  ;;  %v273_v60 = vld [vmem:[#allocation2 + $0x68] sm:$0xff] }
   0xf   :  { %v99_v26 = vld [vmem:[%s914_s6] sm:$0xff]  ;;  %v271_v0 = vld [vmem:[#allocation2 + $0x58] sm:$0xff]  ;;  %v270_v1 = vld [vmem:[#allocation2 + $0x50] sm:$0xff] }
  0x10   :  { %359 = vrot.lane.b32.xlu0 %v162_v6, %s660_s23  ;;  %538 = vmatpush.xpose.msk.msra.mxu2 %vm164_vm1, %v161_v4  ;;  %v860_v54 = vld [vmem:[%s908_s0] ss:$0 sm:$0xff]  ;;  %v452_v23 = vld [vmem:[#allocation2 + $0xd8] sm:$0xff] }
  0x11   :  { %355 = vrot.lane.b32.xlu1 %v160_v7, %s660_s23  ;;  %123 = vmatpush.msra.mxu1 %v99_v26  ;;  %vm146_vm5 = vcmp.eq.s32.totalorder %v139_v53, %v860_v54  ;;  %vm147_vm6 = vcmp.eq.s32.totalorder %v868_v57, %v860_v54  ;;  %v272_v61 = vld [vmem:[#allocation2 + $0x60] sm:$0xff] }
  0x12   :  { %532 = vmatmul.msk.f32.gmra.mxu3 %vm57_vm2, %v757_v8  ;;  %351 = vrot.lane.b32.xlu2 %v158_v9, %s660_s23 }
  0x13   :  { %534 = vmatmul.msk.f32.vlgmr.msra.gmra.mxu1 %vm57_vm2, %v730_v2  ;;  %277 = vmatpush.msrb.mxu3 %v274_v59  ;;  %v881_v2 = vld [vmem:[%s915_s7] ss:$0 sm:$0xff] }
  0x14   :  { %539 = vmatpush.xpose.msk.msra.mxu2 %vm164_vm1, %v160_v7  ;;  %v269_v7 = vld [vmem:[#allocation2 + $0x48] sm:$0xff] }
  0x15   :  { %278 = vmatpush.msrb.mxu3 %v273_v60 }
  0x17   :  { %279 = vmatpush.msrb.mxu3 %v272_v61 }
  0x18   :  { %540 = vmatpush.xpose.msk.msra.mxu2 %vm164_vm1, %v159_v5  ;;  %349 = vrot.lane.b32.xlu0 %v157_v10, %s660_s23 }
  0x19   :  { %347 = vrot.lane.b32.xlu1 %v156_v11, %s660_s23  ;;  %280 = vmatpush.msrb.mxu3 %v271_v0 }
  0x1a   :  { %345 = vrot.lane.b32.xlu2 %v155_v12, %s660_s23 }
  0x1b   :  { %535 = vmatmul.msk.f32.gmra.mxu1 %vm57_vm2, %v757_v8  ;;  %281 = vmatpush.msrb.mxu3 %v270_v1  ;;  %v268_v8 = vld [vmem:[#allocation2 + $0x40] sm:$0xff] }
  0x1c   :  { %541 = vmatpush.xpose.msk.msra.mxu2 %vm164_vm1, %v158_v9  ;;  %v267_v9 = vld [vmem:[#allocation2 + $0x38] sm:$0xff] }
  0x1d   :  { %282 = vmatpush.msrb.mxu3 %v269_v7 }
  0x1f   :  { %283 = vmatpush.msrb.mxu3 %v268_v8 }
  0x20   :  { %542 = vmatpush.xpose.msk.msra.mxu2 %vm164_vm1, %v157_v10  ;;  %343 = vrot.lane.b32.xlu0 %v154_v13, %s660_s23  ;;  %v266_v10 = vld [vmem:[#allocation2 + $0x30] sm:$0xff] }
  0x21   :  { %341 = vrot.lane.b32.xlu1 %v153_v14, %s660_s23  ;;  %284 = vmatpush.msrb.mxu3 %v267_v9  ;;  %v588_v9 = vld [vmem:[%s916_s8 + $0x1] ss:$0 sm:$0xff] }
  0x22   :  { %339 = vrot.lane.b32.xlu2 %v152_v15, %s660_s23 }
  0x23   :  { %285 = vmatpush.msrb.mxu3 %v266_v10 }
  0x24   :  { %543 = vmatpush.xpose.msk.msra.mxu2 %vm164_vm1, %v156_v11  ;;  %v265_v11 = vld [vmem:[#allocation2 + $0x28] sm:$0xff] }
  0x25   :  { %286 = vmatpush.msrb.mxu3 %v265_v11 }
  0x28   :  { %544 = vmatpush.xpose.msk.msra.mxu2 %vm164_vm1, %v155_v12  ;;  %337 = vrot.lane.b32.xlu0 %v151_v16, %s660_s23  ;;  %v264_v12 = vld [vmem:[#allocation2 + $0x20] sm:$0xff] }
  0x29   :  { %335 = vrot.lane.b32.xlu1 %v150_v17, %s660_s23  ;;  %287 = vmatpush.msrb.mxu3 %v264_v12 }
  0x2a   :  { %333 = vrot.lane.b32.xlu2 %v149_v18, %s660_s23 }
  0x2c   :  { %545 = vmatpush.xpose.msk.msra.mxu2 %vm164_vm1, %v154_v13  ;;  %v263_v13 = vld [vmem:[#allocation2 + $0x18] sm:$0xff] }
  0x2d   :  { %288 = vmatpush.msrb.mxu3 %v263_v13 }
  0x30   :  { %546 = vmatpush.xpose.msk.msra.mxu2 %vm164_vm1, %v153_v14  ;;  %331 = vrot.lane.b32.xlu0 %v148_v19, %s660_s23  ;;  %v262_v14 = vld [vmem:[#allocation2 + $0x10] sm:$0xff] }
  0x31   :  { %289 = vmatpush.msrb.mxu3 %v262_v14 }
  0x34   :  { %547 = vmatpush.xpose.msk.msra.mxu2 %vm164_vm1, %v152_v15  ;;  %v261_v15 = vld [vmem:[#allocation2 + $0x8] sm:$0xff] }
  0x35   :  { %290 = vmatpush.msrb.mxu3 %v261_v15 }
  0x38   :  { %548 = vmatpush.xpose.msk.msra.mxu2 %vm164_vm1, %v151_v16  ;;  %v260_v16 = vld [vmem:[#allocation2] sm:$0xff] }
  0x39   :  { %291 = vmatpush.msrb.mxu3 %v260_v16 }
  0x3c   :  { %549 = vmatpush.xpose.msk.msra.mxu2 %vm164_vm1, %v150_v17  ;;  %v456_v17 = vld [vmem:[#allocation2 + $0xf8] sm:$0xff] }
  0x3d   :  { %457 = vmatpush.msrb.mxu1 %v456_v17 }
  0x40   :  { %550 = vmatpush.xpose.msk.msra.mxu2 %vm164_vm1, %v149_v18  ;;  %v455_v18 = vld [vmem:[#allocation2 + $0xf0] sm:$0xff] }
  0x41   :  { %458 = vmatpush.msrb.mxu1 %v455_v18 }
  0x44   :  { %551 = vmatpush.xpose.msk.msra.mxu2 %vm164_vm1, %v148_v19  ;;  %v454_v19 = vld [vmem:[#allocation2 + $0xe8] sm:$0xff] }
  0x45   :  { %459 = vmatpush.msrb.mxu1 %v454_v19 }
  0x64   :  { %v354_v24 = vpop.permute.xlu2 %353 }
  0x6c   :  { %v352_v33 = vpop.permute.xlu2 %351 }
  0x74   :  { %v346_v41 = vpop.permute.xlu2 %345 }
  0x7a   :  { %v362_v20 = vpop.permute.xlu0 %361 }
  0x7b   :  { %554 = vmatpush.xpose.msk.msra.mxu0 %vm164_vm1, %v362_v20  ;;  %v358_v21 = vpop.permute.xlu1 %357 }
  0x7c   :  { %v340_v44 = vpop.permute.xlu2 %339 }
  0x82   :  { %v360_v22 = vpop.permute.xlu0 %359 }
  0x83   :  { %555 = vmatpush.xpose.msk.msra.mxu0 %vm164_vm1, %v360_v22  ;;  %v356_v27 = vpop.permute.xlu1 %355 }
  0x84   :  { %v334_v47 = vpop.permute.xlu2 %333 }
  0x87   :  { %556 = vmatpush.xpose.msk.msra.mxu0 %vm164_vm1, %v358_v21  ;;  %v453_v21 = vld [vmem:[#allocation2 + $0xe0] sm:$0xff] }
  0x88   :  { %460 = vmatpush.msrb.mxu1 %v453_v21 }
  0x8a   :  { %v350_v36 = vpop.permute.xlu0 %349  ;;  %461 = vmatpush.msrb.mxu1 %v452_v23 }
  0x8b   :  { %557 = vmatpush.xpose.msk.msra.mxu0 %vm164_vm1, %v356_v27  ;;  %v348_v40 = vpop.permute.xlu1 %347 }
  0x8d   :  { %v85_v28 = vpop.f32.mrf.mxu3 }
  0x8e   :  { %v86_v29 = vadd.f32 %v584_v25, %v85_v28  ;;  %v449_v28 = vld [vmem:[#allocation2 + $0xc0] sm:$0xff] }
  0x8f   :  { %558 = vmatpush.xpose.msk.msra.mxu0 %vm164_vm1, %v354_v24  ;;  %v451_v24 = vld [vmem:[#allocation2 + $0xd0] sm:$0xff] }
  0x90   :  { %vm91_vm3 = vcmp.gt.f32.partialorder %v86_v29, 0.0  ;;  %v93_v30 = vmul.f32 0.01, %v86_v29  ;;  %v125_v3 = vpop.f32.mrf.mxu1  ;;  %462 = vmatpush.msrb.mxu1 %v451_v24 }
  0x91   :  { %v126_v4 = vadd.f32 %v881_v2, %v125_v3 }
  0x92   :  { %v95_v31 = vsel %vm91_vm3, %v86_v29, %v93_v30  ;;  %v344_v42 = vpop.permute.xlu0 %343 }
  0x93   :  { %v97_v32 = vmul.f32 0.25, %v95_v31  ;;  %559 = vmatpush.xpose.msk.msra.mxu0 %vm164_vm1, %v352_v33  ;;  %v342_v43 = vpop.permute.xlu1 %341  ;;  %v133_v5 = vmul.f32 0.01, %v126_v4  ;;  %vm131_vm7 = vcmp.gt.f32.partialorder %v126_v4, 0.0  ;;  %v448_v31 = vld [vmem:[#allocation2 + $0xb8] sm:$0xff]  ;;  %v447_v33 = vld [vmem:[#allocation2 + $0xb0] sm:$0xff] }
  0x95   :  { %v88_v34 = vpop.f32.mrf.mxu3  ;;  %327 = vrot.lane.b32.xlu1 %v97_v32, %s660_s23  ;;  %552 = vmatmul.msk.f32.vlgmr.msra.gmra.mxu2 %vm164_vm1, %v97_v32  ;;  %v884_v6 = vsel %vm131_vm7, %v126_v4, %v133_v5  ;;  %v587_v5 = vld [vmem:[%s916_s8] ss:$0 sm:$0xff]  ;;  %s663_s8 = smov [#allocation5]  }
  0x96   :  { %v89_v35 = vadd.f32 %v584_v25, %v88_v34  ;;  %v450_v25 = vld [vmem:[#allocation2 + $0xc8] sm:$0xff]  ;;  %s515_s21 = sshll.u32 %s663_s8, 4  ;;  %s516_s21 = int_to_ptr.vmem [resolvable:$true] %s515_s21 }
  0x97   :  { %560 = vmatpush.xpose.msk.msra.mxu0 %vm164_vm1, %v350_v36  ;;  %463 = vmatpush.msrb.mxu1 %v450_v25 }
  0x98   :  { %vm92_vm4 = vcmp.gt.f32.partialorder %v89_v35, 0.0  ;;  %v94_v37 = vmul.f32 0.01, %v89_v35 }
  0x99   :  { %464 = vmatpush.msrb.mxu1 %v449_v28 }
  0x9a   :  { %v96_v38 = vsel %vm92_vm4, %v89_v35, %v94_v37  ;;  %v338_v45 = vpop.permute.xlu0 %337 }
  0x9b   :  { %v98_v39 = vmul.f32 0.25, %v96_v38  ;;  %561 = vmatpush.xpose.msk.msra.mxu0 %vm164_vm1, %v348_v40  ;;  %v336_v46 = vpop.permute.xlu1 %335  ;;  %465 = vmatpush.msrb.mxu1 %v448_v31  ;;  %v445_v40 = vld [vmem:[#allocation2 + $0xa0] sm:$0xff] }
  0x9d   :  { %553 = vmatmul.msk.f32.gmra.mxu2 %vm164_vm1, %v98_v39  ;;  %329 = vrot.lane.b32.xlu2 %v98_v39, %s660_s23  ;;  %v446_v39 = vld [vmem:[#allocation2 + $0xa8] sm:$0xff] }
  0x9e   :  { %466 = vmatpush.msrb.mxu1 %v447_v33 }
  0x9f   :  { %562 = vmatpush.xpose.msk.msra.mxu0 %vm164_vm1, %v346_v41  ;;  %v444_v41 = vld [vmem:[#allocation2 + $0x98] sm:$0xff] }
  0xa0   :  { %467 = vmatpush.msrb.mxu1 %v446_v39 }
  0xa2   :  { %v332_v48 = vpop.permute.xlu0 %331  ;;  %468 = vmatpush.msrb.mxu1 %v445_v40 }
  0xa3   :  { %563 = vmatpush.xpose.msk.msra.mxu0 %vm164_vm1, %v344_v42  ;;  %v443_v42 = vld [vmem:[#allocation2 + $0x90] sm:$0xff] }
  0xa4   :  { %469 = vmatpush.msrb.mxu1 %v444_v41 }
  0xa6   :  { %470 = vmatpush.msrb.mxu1 %v443_v42 }
  0xa7   :  { %564 = vmatpush.xpose.msk.msra.mxu0 %vm164_vm1, %v342_v43  ;;  %v442_v43 = vld [vmem:[#allocation2 + $0x88] sm:$0xff] }
  0xa8   :  { %471 = vmatpush.msrb.mxu1 %v442_v43 }
  0xab   :  { %565 = vmatpush.xpose.msk.msra.mxu0 %vm164_vm1, %v340_v44  ;;  %v441_v44 = vld [vmem:[#allocation2 + $0x80] sm:$0xff] }
  0xac   :  { %472 = vmatpush.msrb.mxu1 %v441_v44 }
  0xaf   :  { %566 = vmatpush.xpose.msk.msra.mxu0 %vm164_vm1, %v338_v45  ;;  %v128_v45 = vpop.f32.mrf.mxu1 }
  0xb3   :  { %567 = vmatpush.xpose.msk.msra.mxu0 %vm164_vm1, %v336_v46  ;;  %v129_v46 = vadd.f32 %v881_v2, %v128_v45 }
  0xb5   :  { %v134_v49 = vmul.f32 0.01, %v129_v46  ;;  %vm132_vm8 = vcmp.gt.f32.partialorder %v129_v46, 0.0 }
  0xb7   :  { %568 = vmatpush.xpose.msk.msra.mxu0 %vm164_vm1, %v334_v47 }
  0xbb   :  { %569 = vmatpush.xpose.msk.msra.mxu0 %vm164_vm1, %v332_v48 }
  0xf7   :  { %v330_v52 = vpop.permute.xlu2 %329 }
 0x107   :  { %v328_v50 = vpop.permute.xlu1 %327 }
 0x108   :  { %570 = vmatmul.msk.f32.vlgmr.msra.gmra.mxu0 %vm164_vm1, %v328_v50 }
 0x110   :  { %571 = vmatmul.msk.f32.gmra.mxu0 %vm164_vm1, %v330_v52  ;;  %v136_v52 = vsel %vm132_vm8, %v129_v46, %v134_v49 }
 0x118   :  { %v236_v55 = vpop.f32.mrf.mxu2 }
 0x119   :  { %v865_v56 = vsel %vm146_vm5, %v236_v55, -1e+09 }
 0x11a   :  { %244 = vmax.xlane.f32.xlu0 %v865_v56 }
 0x120   :  { %v239_v62 = vpop.f32.mrf.mxu2 }
 0x121   :  { %v875_v63 = vsel %vm147_vm6, %v239_v62, -1e+09 }
 0x122   :  { %246 = vmax.xlane.f32.xlu1 %v875_v63 }
 0x13b   :  { %315 = vperm.xlu1 %580, %v884_v6  }
 0x143   :  { %583 = vset.pattern.permute.xlu1 %v662_v51 }
 0x185   :  { %v416_v20 = vpop.f32.mrf.mxu0 }
 0x186   :  { %v422_v22 = vsel %vm146_vm5, %v416_v20, -1e+09 }
 0x187   :  { %424 = vmax.xlane.f32.xlu2 %v422_v22 }
 0x18d   :  { %v419_v26 = vpop.f32.mrf.mxu0  ;;  %v245_v27 = vpop.xlane.xlu0 %244 }
 0x18e   :  { %v248_v29 = vsub.f32 %v865_v56, %v245_v27  ;;  %v423_v30 = vsel %vm147_vm6, %v419_v26, -1e+09 }
 0x18f   :  { %426 = vmax.xlane.f32.xlu2 %v423_v30 }
 0x190   :  { %v250_v32 = vmul.f32 1.442695, %v248_v29 }
 0x192   :  { %589 = vpow2.f32 %v250_v32 }
 0x195   :  { %v247_v34 = vpop.xlane.xlu1 %246 }
 0x196   :  { %v249_v35 = vsub.f32 %v875_v63, %v247_v34 }
 0x198   :  { %v590_v36 = vpop.eup %589  ;;  %v252_v37 = vmul.f32 1.442695, %v249_v35 }
 0x199   :  { %254 = vadd.xlane.f32.xlu0 %v590_v36  ;;  %292 = vmatmul.f32.vlgmr.msrb.gmra.mxu3 %v590_v36 }
 0x19a   :  { %591 = vpow2.f32 %v252_v37 }
 0x1a0   :  { %v592_v38 = vpop.eup %591 }
 0x1a1   :  { %256 = vadd.xlane.f32.xlu1 %v592_v38  ;;  %295 = vmatmul.f32.gmra.mxu3 %v592_v38 }
 0x1ad   :  { %v316_v58 = vpop.permute.xlu1 %315 }
 0x1ba   :  { %500 = vperm.xlu1 %583, %v136_v52  }
 0x1fa   :  { %v425_v47 = vpop.xlane.xlu2 %424 }
 0x1fb   :  { %v428_v48 = vsub.f32 %v422_v22, %v425_v47 }
 0x1fd   :  { %v430_v50 = vmul.f32 1.442695, %v428_v48 }
 0x1ff   :  { %593 = vpow2.f32 %v430_v50 }
 0x202   :  { %v427_v53 = vpop.xlane.xlu2 %426 }
 0x203   :  { %v429_v54 = vsub.f32 %v423_v30, %v427_v53 }
 0x205   :  { %v594_v55 = vpop.eup %593  ;;  %v432_v56 = vmul.f32 1.442695, %v429_v54 }
 0x206   :  { %473 = vmatmul.f32.vlgmr.msrb.gmra.mxu1 %v594_v55  ;;  %434 = vadd.xlane.f32.xlu2 %v594_v55 }
 0x207   :  { %595 = vpow2.f32 %v432_v56 }
 0x20c   :  { %v255_v60 = vpop.xlane.xlu0 %254 }
 0x20d   :  { %v596_v57 = vpop.eup %595  ;;  %597 = vrcp.f32 %v255_v60 }
 0x20e   :  { %476 = vmatmul.f32.gmra.mxu1 %v596_v57  ;;  %436 = vadd.xlane.f32.xlu0 %v596_v57 }
 0x213   :  { %v598_v2 = vpop.eup %597 }
 0x214   :  { %v257_v61 = vpop.xlane.xlu1 %256 }
 0x215   :  { %599 = vrcp.f32 %v257_v61 }
 0x21b   :  { %v600_v3 = vpop.eup %599 }
 0x21c   :  { %v293_v59 = vpop.f32.mrf.mxu3 }
 0x21d   :  { %v299_v4 = vmul.f32 %v598_v2, %v293_v59 }
 0x21e   :  { %320 = vperm.xlu2 %581, %v136_v52  }
 0x21f   :  { %v305_v10 = vadd.f32 %v587_v5, %v299_v4 }
 0x221   :  { %v309_v16 = vmul.f32 0.01, %v305_v10  ;;  %vm307_vm9 = vcmp.gt.f32.partialorder %v305_v10, 0.0 }
 0x222   :  { %496 = vperm.xlu0 %582, %v884_v6  }
 0x223   :  { %v311_v23 = vsel %vm307_vm9, %v305_v10, %v309_v16 }
 0x224   :  { %v296_v0 = vpop.f32.mrf.mxu3  ;;  %v323_v30 = vmul.f32 %v316_v58, %v311_v23 }
 0x225   :  { %v300_v6 = vmul.f32 %v600_v3, %v296_v0 }
 0x227   :  { %v306_v11 = vadd.f32 %v587_v5, %v300_v6 }
 0x229   :  { %v310_v17 = vmul.f32 0.01, %v306_v11  ;;  %vm308_vm10 = vcmp.gt.f32.partialorder %v306_v11, 0.0 }
 0x22b   :  { %v312_v24 = vsel %vm308_vm10, %v306_v11, %v310_v17 }
 0x22c   :  { %v501_v21 = vpop.permute.xlu1 %500 }
 0x279   :  { %v435_v62 = vpop.xlane.xlu2 %434 }
 0x27a   :  { %601 = vrcp.f32 %v435_v62 }
 0x280   :  { %v602_v7 = vpop.eup %601 }
 0x281   :  { %v437_v63 = vpop.xlane.xlu0 %436  ;;  %v321_v19 = vpop.permute.xlu2 %320 }
 0x282   :  { %603 = vrcp.f32 %v437_v63  ;;  %v324_v26 = vmul.f32 %v321_v19, %v312_v24 }
 0x283   :  { %v474_v1 = vpop.f32.mrf.mxu1 }
 0x284   :  { %v480_v8 = vmul.f32 %v602_v7, %v474_v1 }
 0x286   :  { %v487_v14 = vadd.f32 %v588_v9, %v480_v8 }
 0x288   :  { %v604_v12 = vpop.eup %603  ;;  %v491_v22 = vmul.f32 0.01, %v487_v14  ;;  %vm489_vm12 = vcmp.gt.f32.partialorder %v487_v14, 0.0 }
 0x28a   :  { %v493_v28 = vsel %vm489_vm12, %v487_v14, %v491_v22 }
 0x28b   :  { %v477_v13 = vpop.f32.mrf.mxu1 }
 0x28c   :  { %v481_v15 = vmul.f32 %v604_v12, %v477_v13 }
 0x28e   :  { %v488_v18 = vadd.f32 %v588_v9, %v481_v15 }
 0x290   :  { %vm490_vm11 = vcmp.gt.f32.partialorder %v488_v18, 0.0  ;;  %v492_v20 = vmul.f32 0.01, %v488_v18 }
 0x292   :  { %v494_v25 = vsel %vm490_vm11, %v488_v18, %v492_v20 }
 0x293   :  { %v504_v27 = vmul.f32 %v501_v21, %v494_v25 }
 0x294   :  { %v497_v29 = vpop.permute.xlu0 %496 }
 0x295   :  { %v508_v31 = vadd.f32 %v504_v27, %v324_v26  ;;  %v503_v32 = vmul.f32 %v497_v29, %v493_v28 }
 0x297   :  { %510 = vst [vmem:[#allocation5 + $0x8] sm:$0xff] %v508_v31  ;;  %v507_v33 = vadd.f32 %v503_v32, %v323_v30 }
 0x299   :  { %509 = vst [vmem:[#allocation5] sm:$0xff] %v507_v33 }
 0x29a   :  { %523 = dma.vmem_to_hbm [thread:$0]  %s516_s21, 256, %s518_s25, [#allocation4], %s658_s14, %s658_s14, %s659_s15  }
 0x29b   :  { %655 = dma.done.wait [#allocation4], 256  }
 0x29c   :  { %656 = vsyncadd [#allocation4], 4294967040 }
 0x29d   :  { %528 = vsyncpa [#allocation3], 1 }
 0x29e   :  { %529 = vsyncpa [#allocation4], 1 }

</bundles_post_ra>
